<compile_context>
chip_gen: v7x
topology: tpu7x:2x2x1
jax: 0.10.0
libtpu: 0.0.40
codegen_flags: <defaults>
</compile_context>

<pallas_src>
import jax
import jax.numpy as jnp
from jax.experimental import pallas as pl
from jax.experimental.pallas import tpu as pltpu

LANE = 128  # lane width of a TPU vreg — lane-dense output target


def linear_tanh_kernel(x_ref, w_ref, b_ref, o_ref):
    # v1 = x @ W_kn + b   (W_kn is [IN, OUT_pad]: standard [M,K]x[K,N] matmul)
    # v2 = tanh(v1)
    v1 = jnp.dot(x_ref[...], w_ref[...],
                 preferred_element_type=jnp.float32) + b_ref[...]
    o_ref[...] = jnp.tanh(v1).astype(o_ref.dtype)


def prepare_params(weight, bias):
    """One-time prep: weight [OUT, IN] -> [IN, OUT_pad], bias [OUT] -> [1, OUT_pad].

    OUT is zero-padded up to a multiple of 128 so the kernel's output (and the
    bias broadcast) are lane-dense. Padded columns compute tanh(0) = 0 and are
    sliced away by the wrapper.
    """
    out_features, in_features = weight.shape
    out_pad = max(LANE, pl.cdiv(out_features, LANE) * LANE)
    w_kn = jnp.zeros((in_features, out_pad), weight.dtype)
    w_kn = w_kn.at[:, :out_features].set(weight.T)
    b_p = jnp.zeros((1, out_pad), bias.dtype)
    b_p = b_p.at[:, :out_features].set(bias)
    return w_kn, b_p, out_features


def linear_tanh(x, w_kn, b_p, out_features):
    """x: [B, IN], w_kn: [IN, OUT_pad], b_p: [1, OUT_pad] -> [B, OUT]."""
    B, _ = x.shape
    out_pad = w_kn.shape[1]

    # Gridless, fully VMEM-resident invocation: no per-step pipeline
    # bookkeeping, no prefetch machinery. Lane-dense (B, OUT_pad) output.
    out_padded = pl.pallas_call(
        linear_tanh_kernel,
        out_shape=jax.ShapeDtypeStruct((B, out_pad), x.dtype),
        in_specs=[
            pl.BlockSpec(memory_space=pltpu.MemorySpace.VMEM),   # x   [B, IN]
            pl.BlockSpec(memory_space=pltpu.MemorySpace.VMEM),   # W   [IN, OUT_pad]
            pl.BlockSpec(memory_space=pltpu.MemorySpace.VMEM),   # b   [1, OUT_pad]
        ],
        out_specs=pl.BlockSpec(memory_space=pltpu.MemorySpace.VMEM),
    )(x, w_kn, b_p)

    return out_padded[:, :out_features]


if __name__ == "__main__":
    key = jax.random.PRNGKey(0)
    kx, kw, kb = jax.random.split(key, 3)

    B, IN, OUT = 2, 7, 3
    x2 = jax.random.normal(kx, (B, IN), dtype=jnp.float32)

    # Deterministic init mimicking torch.nn.Linear(7, 3):
    # uniform(-1/sqrt(in_features), 1/sqrt(in_features))
    bound = 1.0 / (IN ** 0.5)
    weight = jax.random.uniform(kw, (OUT, IN), minval=-bound, maxval=bound,
                                dtype=jnp.float32)
    bias = jax.random.uniform(kb, (OUT,), minval=-bound, maxval=bound,
                              dtype=jnp.float32)

    # One-time parameter preparation (transpose + lane-dense padding).
    w_kn, b_p, out_features = prepare_params(weight, bias)

    out = linear_tanh(x2, w_kn, b_p, out_features)
    out = jax.block_until_ready(out)

    # Reference check in plain JAX.
    ref = jnp.tanh(x2 @ weight.T + bias)
    assert out.shape == (B, OUT)
    assert jnp.allclose(out, ref, atol=1e-5), "mismatch vs reference"

    print("KERNEL_OK")
</pallas_src>

<mosaic_0001>
module attributes {stable_mosaic.version = 11 : i64} {
  func.func @linear_tanh_kernel(%arg0: memref<2x7xf32, #tpu.memory_space<vmem>>, %arg1: memref<7x128xf32, #tpu.memory_space<vmem>>, %arg2: memref<1x128xf32, #tpu.memory_space<vmem>>, %arg3: memref<2x128xf32, #tpu.memory_space<vmem>>) attributes {dimension_semantics = [], scalar_prefetch = 0 : i64, scratch_operands = 0 : i64, tpu.core_type = #tpu.core_type<tc>} {
    %c0 = arith.constant 0 : index
    %c0_0 = arith.constant 0 : index
    %0 = vector.load %arg0[%c0, %c0_0] : memref<2x7xf32, #tpu.memory_space<vmem>>, vector<2x7xf32>
    %c0_1 = arith.constant 0 : index
    %c0_2 = arith.constant 0 : index
    %1 = vector.load %arg1[%c0_1, %c0_2] : memref<7x128xf32, #tpu.memory_space<vmem>>, vector<7x128xf32>
    %cst = arith.constant dense<0.000000e+00> : vector<2x128xf32>
    %2 = tpu.matmul %0, %1, %cst {dimension_numbers = #tpu.dot_dimension_numbers<[1], [0], [0], [1], [0, 0, 1, 1], [], []>} : vector<2x7xf32>, vector<7x128xf32>, vector<2x128xf32> -> vector<2x128xf32>
    %c0_3 = arith.constant 0 : index
    %c0_4 = arith.constant 0 : index
    %3 = vector.load %arg2[%c0_3, %c0_4] : memref<1x128xf32, #tpu.memory_space<vmem>>, vector<1x128xf32>
    %4 = vector.broadcast %3 : vector<1x128xf32> to vector<2x128xf32>
    %5 = arith.addf %2, %4 : vector<2x128xf32>
    %6 = math.tanh %5 : vector<2x128xf32>
    %c0_5 = arith.constant 0 : index
    %c0_6 = arith.constant 0 : index
    %7 = vector.load %arg3[%c0_5, %c0_6] : memref<2x128xf32, #tpu.memory_space<vmem>>, vector<2x128xf32>
    tpu.vector_store %arg3[%c0_5, %c0_6], %6 {strides = array<i32>} : memref<2x128xf32, #tpu.memory_space<vmem>>, vector<2x128xf32>,
    return
  }
}

</mosaic_0001>

<bundles_post_ra>
// kernel: tpu_custom_call.1
= control target key start
LH: loop header
LB: loop body
LE: loop exit
PB: predicated region body
PF: predicated region fallthrough
CT: control target
= control target key end

     0   :  { %8 = vsyncpa [#allocation3], 0  ;;  %s297_s0 = inlined_call_operand.hbm [shape: f32[2,7], index: 0, kind: input, shape index: {}]   ;;  %s298_s1 = inlined_call_operand.hbm [shape: f32[7,128], index: 1, kind: input, shape index: {}]   ;;  %s299_s2 = inlined_call_operand.vmem [shape: f32[1,128], index: 2, kind: input, shape index: {}]   ;;  %s300_s3 = inlined_call_operand.hbm [shape: f32[2,128], index: 3, kind: output, shape index: {}]  }
   0x1   :  { %9 = vsyncpa [#allocation6], 0 }
   0x2   :  { %10 = vsyncpa [#allocation4], 0  ;;  %s233_s12 = smov [#allocation2]   ;;  %s234_s14 = smov [#allocation5]  }
   0x3   :  { %s17_s13 = sshll.u32 %s233_s12, 4  ;;  %s27_s15 = sshll.u32 %s234_s14, 4  ;;  %s18_s13 = int_to_ptr.vmem [resolvable:$true] %s17_s13  ;;  %s28_s15 = int_to_ptr.vmem [resolvable:$true] %s27_s15 }
   0x4   :  { %s161_s18 = scalar_lea.hbm %s297_s0, 32 }
   0x5   :  { %p162_p0 = scmp.ne.s32.totalorder %s297_s0, %s161_s18  ;;  %p165_p1 = scmp.lt.u32.totalorder %s161_s18, %s297_s0 }
   0x7   :  { %p167_p2 = pnand %p165_p1, %p162_p0 }
   0x9   :  { %170 = shalt.err (!%p167_p2)
}
   0xa   :  { %s171_s23 = scalar_lea.vmem %s18_s13, 32  ;;  %p176_p4 = scmp.lt.s32.totalorder %s18_s13, %s18_s13 }
   0xb   :  { %p172_p3 = scmp.ne.s32.totalorder %s18_s13, %s171_s23  ;;  %p177_p5 = scmp.lt.s32.totalorder %s171_s23, %s171_s23 }
   0xd   :  { %p178_p6 = por %p177_p5, %p176_p4 }
   0xf   :  { %p179_p7 = pnand %p178_p6, %p172_p3 }
  0x11   :  { %182 = shalt.err (!%p179_p7)
}
  0x12   :  { %20 = dma.hbm_to_vmem [thread:$0]  %s297_s0, 32, %s18_s13, [#allocation3]  }
  0x13   :  { %s183_s28 = scalar_lea.hbm %s298_s1, 128 }
  0x14   :  { %p184_p8 = scmp.ne.s32.totalorder %s298_s1, %s183_s28  ;;  %p187_p9 = scmp.lt.u32.totalorder %s183_s28, %s298_s1 }
  0x16   :  { %p189_p10 = pnand %p187_p9, %p184_p8 }
  0x18   :  { %192 = shalt.err (!%p189_p10)
}
  0x19   :  { %s193_s6 = scalar_lea.vmem %s28_s15, 128  ;;  %p198_p12 = scmp.lt.s32.totalorder %s28_s15, %s28_s15 }
  0x1a   :  { %p194_p11 = scmp.ne.s32.totalorder %s28_s15, %s193_s6  ;;  %p199_p13 = scmp.lt.s32.totalorder %s193_s6, %s193_s6 }
  0x1c   :  { %p200_p0 = por %p199_p13, %p198_p12 }
  0x1e   :  { %p201_p1 = pnand %p200_p0, %p194_p11 }
  0x20   :  { %204 = shalt.err (!%p201_p1)
}
  0x21   :  { %30 = dma.hbm_to_vmem [thread:$0]  %s298_s1, 128, %s28_s15, [#allocation6]  }
  0x22   :  { %227 = dma.done.wait [#allocation3], 32  }
  0x23   :  { %228 = vsyncadd [#allocation3], 4294967264 }
  0x24   :  { %229 = dma.done.wait [#allocation6], 128  }
  0x25   :  { %230 = vsyncadd [#allocation6], 4294967168  ;;  %v235_v0 = vmov 0.0   ;;  %vm236_vm0 = vmmov 0   ;;  %vm52_vm1 = vcmask 1046528   ;;  %vm48_vm2 = vcmask 56320  }
  0x26   :  { %149 = vmatprep.subr.mxu0 %v235_v0  ;;  %151 = vmatprep.mubr.msk.f32.mxu0 %vm236_vm0, %v235_v0  ;;  %v40_v1 = vld [vmem:[#allocation5] sm:$0x7f]  ;;  %v39_v2 = vld [vmem:[#allocation2] sm:$0x3]  ;;  %s237_s1 = smov [#allocation7]  }
  0x27   :  { %150 = vmatpush3.msk.msra.mxu0 %vm52_vm1, %v40_v1  ;;  %v144_v3 = vld [vmem:[%s299_s2] ss:$0 sm:$0xff]  ;;  %s134_s10 = sshll.u32 %s237_s1, 4  ;;  %s135_s10 = int_to_ptr.vmem [resolvable:$true] %s134_s10 }
  0x28   :  { %152 = vmatmul.mubr.msk.f32.vlgmr.msra.gmra.mrb[0].mxu0 %vm48_vm2, %v39_v2  ;;  %s205_s11 = scalar_lea.vmem %s135_s10, 32  ;;  %p210_p3 = scmp.lt.s32.totalorder %s135_s10, %s135_s10 }
  0x29   :  { %p206_p2 = scmp.ne.s32.totalorder %s135_s10, %s205_s11  ;;  %p211_p4 = scmp.lt.s32.totalorder %s205_s11, %s205_s11 }
  0x2b   :  { %p212_p5 = por %p211_p4, %p210_p3 }
  0x2d   :  { %p213_p6 = pnand %p212_p5, %p206_p2 }
  0xfb   :  { %v122_v4 = vpop.f32.mrb[0].mxu0 }
  0xfc   :  { %v123_v5 = vadd.f32 %v144_v3, %v122_v4  ;;  %v153_v6 = vpop.f32.mrb[1].mxu0 }
  0xfe   :  { %159 = vtanh.f32 %v123_v5 }
 0x108   :  { %v160_v7 = vpop.eup %159 }
 0x109   :  { %127 = vst [vmem:[#allocation7] sm:$0x3] %v160_v7 }
 0x10a   :  { %216 = shalt.err (!%p213_p6)
}
 0x10b   :  { %s217_s2 = scalar_lea.hbm %s300_s3, 32 }
 0x10c   :  { %p218_p7 = scmp.ne.s32.totalorder %s300_s3, %s217_s2  ;;  %p221_p8 = scmp.lt.u32.totalorder %s217_s2, %s300_s3 }
 0x10e   :  { %p223_p9 = pnand %p221_p8, %p218_p7 }
 0x110   :  { %226 = shalt.err (!%p223_p9)
}
 0x111   :  { %137 = dma.vmem_to_hbm [thread:$0]  %s135_s10, 32, %s300_s3, [#allocation4]  }
 0x112   :  { %231 = dma.done.wait [#allocation4], 32  }
 0x113   :  { %232 = vsyncadd [#allocation4], 4294967264 }
 0x114   :  { %141 = vsyncpa [#allocation3], 1 }
 0x115   :  { %142 = vsyncpa [#allocation6], 1 }
 0x116   :  { %143 = vsyncpa [#allocation4], 1 }

</bundles_post_ra>
